<compile_context>
chip_gen: v6e
topology: v6e:2x2x1
jax: 0.10.0
libtpu: 0.0.40
codegen_flags: <defaults>
</compile_context>

<pallas_src>
import functools

import jax
import jax.numpy as jnp
from jax.experimental import pallas as pl
from jax.experimental.pallas import tpu as pltpu


def mlp_argmax_kernel(emb_ref, w1_ref, b1_ref, w2_ref, b2_ref, tok_ref,
                      h_ref, m_ref, idx_ref, *, tile_v):
    """fc1+relu once, then per-vocab-tile fc2 + running argmax."""
    j = pl.program_id(0)

    @pl.when(j == 0)
    def _():
        # fc1 + ReLU for the B last-token rows; keep hidden resident (bf16).
        h = jnp.dot(emb_ref[...], w1_ref[...],
                    preferred_element_type=jnp.float32) + b1_ref[...]
        h = jnp.maximum(h, 0.0)                      # f32 element-wise tail
        h_ref[...] = h.astype(h_ref.dtype)
        m_ref[...] = jnp.full_like(m_ref, -jnp.inf)
        idx_ref[...] = jnp.zeros_like(idx_ref)

    # fc2 for this vocab tile -> (B, tile_v) f32 logits.
    logits = jnp.dot(h_ref[...], w2_ref[...],
                     preferred_element_type=jnp.float32) + b2_ref[...]

    # Per-tile argmax (first-index tie-break, like torch.argmax / jnp.argmax).
    tile_max = jnp.max(logits, axis=-1, keepdims=True)                 # (B, 1)
    lane = jax.lax.broadcasted_iota(jnp.int32, logits.shape, 1)
    tile_arg = jnp.min(jnp.where(logits >= tile_max, lane, tile_v),
                       axis=-1, keepdims=True)                          # (B, 1)
    tile_arg = tile_arg + j * tile_v

    # Running global argmax: strict '>' keeps the earlier tile on ties,
    # preserving first-index semantics across tiles.
    better = tile_max > m_ref[...]
    m_ref[...] = jnp.where(better, tile_max, m_ref[...])
    idx_ref[...] = jnp.where(better, tile_arg, idx_ref[...])

    @pl.when(j == pl.num_programs(0) - 1)
    def _():
        tok_ref[...] = idx_ref[...]


def my_model_forward(token_ids, params, *, temperature=0.7, tile_v=None):
    emb_table, w1, b1, w2, b2 = params
    B = token_ids.shape[0]
    E = emb_table.shape[1]
    H = w1.shape[1]
    V = w2.shape[1]
    # argmax(softmax(x / T)) == argmax(x) for T > 0 -> temperature/softmax are
    # dropped from the hot path without changing the module's output.
    del temperature

    if tile_v is None:
        tile_v = min(V, 512)     # >=256-wide N tiles for v6e/v7x MXU at scale
    assert V % tile_v == 0, (V, tile_v)

    # Only the last position contributes to the output: gather B rows, not B*S.
    last_ids = token_ids[:, -1]
    emb = jnp.take(emb_table, last_ids, axis=0).astype(jnp.bfloat16)    # (B, E)
    w1b = w1.astype(jnp.bfloat16)
    w2b = w2.astype(jnp.bfloat16)

    cost = pl.CostEstimate(
        flops=2 * B * (E * H + H * V),
        transcendentals=0,
        bytes_accessed=2 * (B * E + E * H + H * V) + 4 * (H + V) + 4 * B,
    )

    kernel = functools.partial(mlp_argmax_kernel, tile_v=tile_v)

    # TODO(synk): at real batch sizes add a batch grid axis marked "parallel"
    # (v7x megacore); with B=2 and a vocab-reduction axis it stays "arbitrary".
    out = pl.pallas_call(
        kernel,
        out_shape=jax.ShapeDtypeStruct((B, 1), jnp.int32),
        grid=(V // tile_v,),
        in_specs=[
            pl.BlockSpec((B, E), lambda j: (0, 0)),        # resident
            pl.BlockSpec((E, H), lambda j: (0, 0)),        # resident
            pl.BlockSpec((1, H), lambda j: (0, 0)),        # resident
            pl.BlockSpec((H, tile_v), lambda j: (0, j)),   # streamed over vocab
            pl.BlockSpec((1, tile_v), lambda j: (0, j)),   # streamed over vocab
        ],
        out_specs=pl.BlockSpec((B, 1), lambda j: (0, 0)),
        scratch_shapes=[
            pltpu.VMEM((B, H), jnp.bfloat16),   # hidden activations
            pltpu.VMEM((B, 1), jnp.float32),    # running max logit
            pltpu.VMEM((B, 1), jnp.int32),      # running argmax index
        ],
        compiler_params=pltpu.CompilerParams(
            dimension_semantics=("arbitrary",)),
        cost_estimate=cost,
    )(emb, w1b, b1, w2b, b2)

    return out[:, 0]


def init_params(key, vocab_size, embed_dim, hid_dim):
    k_em, k_w1, k_b1, k_w2, k_b2 = jax.random.split(key, 5)
    emb_table = jax.random.normal(k_em, (vocab_size, embed_dim), jnp.float32) * 0.02
    w1 = jax.random.normal(k_w1, (embed_dim, hid_dim), jnp.float32) * 0.05
    b1 = jax.random.normal(k_b1, (1, hid_dim), jnp.float32) * 0.01
    w2 = jax.random.normal(k_w2, (hid_dim, vocab_size), jnp.float32) * 0.05
    b2 = jax.random.normal(k_b2, (1, vocab_size), jnp.float32) * 0.01
    return emb_table, w1, b1, w2, b2


def reference_forward(token_ids, params, *, temperature=0.7):
    """Pure-JAX reference mirroring the PyTorch module (full sequence, softmax,
    argmax) with the same bf16-weight / f32-accumulate precision policy."""
    emb_table, w1, b1, w2, b2 = params
    x = jnp.take(emb_table, token_ids, axis=0).astype(jnp.bfloat16)     # (B,S,E)
    w1b = w1.astype(jnp.bfloat16)
    w2b = w2.astype(jnp.bfloat16)
    h = jnp.dot(x, w1b, preferred_element_type=jnp.float32) + b1[0]
    h = jnp.maximum(h, 0.0).astype(jnp.bfloat16)
    logits = jnp.dot(h, w2b, preferred_element_type=jnp.float32) + b2[0]
    scaled = logits[:, -1, :] / temperature
    probs = jax.nn.softmax(scaled, axis=-1)
    return jnp.argmax(probs, axis=-1).astype(jnp.int32)


if __name__ == "__main__":
    # Small synthetic shapes consistent with the module's forward.
    B, S = 2, 8
    VOCAB, EMBED, HID = 128, 32, 64
    TEMPERATURE = 0.7

    key = jax.random.PRNGKey(0)
    k_params, k_tokens = jax.random.split(key)
    params = init_params(k_params, VOCAB, EMBED, HID)
    token_ids = jax.random.randint(k_tokens, (B, S), 0, VOCAB, dtype=jnp.int32)

    out = jax.block_until_ready(
        my_model_forward(token_ids, params, temperature=TEMPERATURE))
    ref = jax.block_until_ready(
        reference_forward(token_ids, params, temperature=TEMPERATURE))

    assert out.shape == (B,) and out.dtype == jnp.int32
    assert bool(jnp.all(out == ref)), (out, ref)

    print("KERNEL_OK")
</pallas_src>

<mosaic_0001>
module attributes {stable_mosaic.version = 11 : i64} {
  func.func @mlp_argmax_kernel(%arg0: i32, %arg1: memref<2x32xbf16, #tpu.memory_space<vmem>>, %arg2: memref<32x64xbf16, #tpu.memory_space<vmem>>, %arg3: memref<1x64xf32, #tpu.memory_space<vmem>>, %arg4: memref<64x128xbf16, #tpu.memory_space<vmem>>, %arg5: memref<1x128xf32, #tpu.memory_space<vmem>>, %arg6: memref<2x1xi32, #tpu.memory_space<vmem>>, %arg7: memref<2x64xbf16, #tpu.memory_space<vmem>>, %arg8: memref<2x1xf32, #tpu.memory_space<vmem>>, %arg9: memref<2x1xi32, #tpu.memory_space<vmem>>) attributes {dimension_semantics = [#tpu.dimension_semantics<arbitrary>], iteration_bounds = array<i64: 1>, scalar_prefetch = 0 : i64, scratch_operands = 3 : i64, tpu.core_type = #tpu.core_type<tc>, window_params = [{pipeline_mode = #tpu.pipeline_mode<synchronous>, transform_indices = @transform_0, window_bounds = array<i64: 2, 32>}, {pipeline_mode = #tpu.pipeline_mode<synchronous>, transform_indices = @transform_1, window_bounds = array<i64: 32, 64>}, {pipeline_mode = #tpu.pipeline_mode<synchronous>, transform_indices = @transform_2, window_bounds = array<i64: 1, 64>}, {transform_indices = @transform_3, window_bounds = array<i64: 64, 128>}, {transform_indices = @transform_4, window_bounds = array<i64: 1, 128>}, {pipeline_mode = #tpu.pipeline_mode<synchronous>, transform_indices = @transform_5, window_bounds = array<i64: 2, 1>}]} {
    %c0_i32 = arith.constant 0 : i32
    %0 = arith.cmpi eq, %arg0, %c0_i32 : i32
    %1 = arith.extui %0 : i1 to i32
    %c0_i32_0 = arith.constant 0 : i32
    %2 = arith.cmpi ne, %1, %c0_i32_0 : i32
    scf.if %2 {
      %c0_21 = arith.constant 0 : index
      %c0_22 = arith.constant 0 : index
      %32 = vector.load %arg1[%c0_21, %c0_22] : memref<2x32xbf16, #tpu.memory_space<vmem>>, vector<2x32xbf16>
      %c0_23 = arith.constant 0 : index
      %c0_24 = arith.constant 0 : index
      %33 = vector.load %arg2[%c0_23, %c0_24] : memref<32x64xbf16, #tpu.memory_space<vmem>>, vector<32x64xbf16>
      %cst_25 = arith.constant dense<0.000000e+00> : vector<2x64xf32>
      %34 = tpu.matmul %32, %33, %cst_25 {dimension_numbers = #tpu.dot_dimension_numbers<[1], [0], [0], [1], [0, 0, 1, 1], [], []>} : vector<2x32xbf16>, vector<32x64xbf16>, vector<2x64xf32> -> vector<2x64xf32>
      %c0_26 = arith.constant 0 : index
      %c0_27 = arith.constant 0 : index
      %35 = vector.load %arg3[%c0_26, %c0_27] : memref<1x64xf32, #tpu.memory_space<vmem>>, vector<1x64xf32>
      %36 = vector.broadcast %35 : vector<1x64xf32> to vector<2x64xf32>
      %37 = arith.addf %34, %36 : vector<2x64xf32>
      %cst_28 = arith.constant 0.000000e+00 : f32
      %38 = vector.broadcast %cst_28 : f32 to vector<2x64xf32>
      %39 = arith.maximumf %37, %38 : vector<2x64xf32>
      %40 = arith.truncf %39 : vector<2x64xf32> to vector<2x64xbf16>
      %c0_29 = arith.constant 0 : index
      %c0_30 = arith.constant 0 : index
      %41 = vector.load %arg7[%c0_29, %c0_30] : memref<2x64xbf16, #tpu.memory_space<vmem>>, vector<2x64xbf16>
      tpu.vector_store %arg7[%c0_29, %c0_30], %40 {strides = array<i32>} : memref<2x64xbf16, #tpu.memory_space<vmem>>, vector<2x64xbf16>,
      %cst_31 = arith.constant 0xFF800000 : f32
      %42 = vector.broadcast %cst_31 : f32 to vector<2x1xf32>
      %c0_32 = arith.constant 0 : index
      %c0_33 = arith.constant 0 : index
      %43 = vector.load %arg8[%c0_32, %c0_33] : memref<2x1xf32, #tpu.memory_space<vmem>>, vector<2x1xf32>
      tpu.vector_store %arg8[%c0_32, %c0_33], %42 {strides = array<i32>} : memref<2x1xf32, #tpu.memory_space<vmem>>, vector<2x1xf32>,
      %c0_i32_34 = arith.constant 0 : i32
      %44 = vector.broadcast %c0_i32_34 : i32 to vector<2x1xi32>
      %c0_35 = arith.constant 0 : index
      %c0_36 = arith.constant 0 : index
      %45 = vector.load %arg9[%c0_35, %c0_36] : memref<2x1xi32, #tpu.memory_space<vmem>>, vector<2x1xi32>
      tpu.vector_store %arg9[%c0_35, %c0_36], %44 {strides = array<i32>} : memref<2x1xi32, #tpu.memory_space<vmem>>, vector<2x1xi32>,
    } else {
    }
    %c0 = arith.constant 0 : index
    %c0_1 = arith.constant 0 : index
    %3 = vector.load %arg7[%c0, %c0_1] : memref<2x64xbf16, #tpu.memory_space<vmem>>, vector<2x64xbf16>
    %c0_2 = arith.constant 0 : index
    %c0_3 = arith.constant 0 : index
    %4 = vector.load %arg4[%c0_2, %c0_3] : memref<64x128xbf16, #tpu.memory_space<vmem>>, vector<64x128xbf16>
    %cst = arith.constant dense<0.000000e+00> : vector<2x128xf32>
    %5 = tpu.matmul %3, %4, %cst {dimension_numbers = #tpu.dot_dimension_numbers<[1], [0], [0], [1], [0, 0, 1, 1], [], []>} : vector<2x64xbf16>, vector<64x128xbf16>, vector<2x128xf32> -> vector<2x128xf32>
    %c0_4 = arith.constant 0 : index
    %c0_5 = arith.constant 0 : index
    %6 = vector.load %arg5[%c0_4, %c0_5] : memref<1x128xf32, #tpu.memory_space<vmem>>, vector<1x128xf32>
    %7 = vector.broadcast %6 : vector<1x128xf32> to vector<2x128xf32>
    %8 = arith.addf %5, %7 : vector<2x128xf32>
    %cst_6 = arith.constant dense<0xFF800000> : vector<2xf32>
    %9 = vector.multi_reduction <maximumf>, %8, %cst_6 [1] : vector<2x128xf32> to vector<2xf32>
    %10 = vector.shape_cast %9 : vector<2xf32> to vector<2x1xf32>
    %11 = tpu.iota {dimensions = array<i32: 1>} : vector<2x128xi32>
    %12 = vector.broadcast %10 : vector<2x1xf32> to vector<2x128xf32>
    %13 = arith.cmpf oge, %8, %12 : vector<2x128xf32>
    %c128_i32 = arith.constant 128 : i32
    %14 = vector.broadcast %c128_i32 : i32 to vector<2x128xi32>
    %15 = arith.select %13, %11, %14 : vector<2x128xi1>, vector<2x128xi32>
    %cst_7 = arith.constant dense<2147483647> : vector<2xi32>
    %16 = vector.multi_reduction <minsi>, %15, %cst_7 [1] : vector<2x128xi32> to vector<2xi32>
    %17 = vector.shape_cast %16 : vector<2xi32> to vector<2x1xi32>
    %c128_i32_8 = arith.constant 128 : i32
    %18 = arith.muli %arg0, %c128_i32_8 : i32
    %19 = vector.broadcast %18 : i32 to vector<2x1xi32>
    %20 = arith.addi %17, %19 : vector<2x1xi32>
    %c0_9 = arith.constant 0 : index
    %c0_10 = arith.constant 0 : index
    %21 = vector.load %arg8[%c0_9, %c0_10] : memref<2x1xf32, #tpu.memory_space<vmem>>, vector<2x1xf32>
    %22 = arith.cmpf ogt, %10, %21 : vector<2x1xf32>
    %c0_11 = arith.constant 0 : index
    %c0_12 = arith.constant 0 : index
    %23 = vector.load %arg8[%c0_11, %c0_12] : memref<2x1xf32, #tpu.memory_space<vmem>>, vector<2x1xf32>
    %24 = arith.select %22, %10, %23 : vector<2x1xi1>, vector<2x1xf32>
    %c0_13 = arith.constant 0 : index
    %c0_14 = arith.constant 0 : index
    %25 = vector.load %arg8[%c0_13, %c0_14] : memref<2x1xf32, #tpu.memory_space<vmem>>, vector<2x1xf32>
    tpu.vector_store %arg8[%c0_13, %c0_14], %24 {strides = array<i32>} : memref<2x1xf32, #tpu.memory_space<vmem>>, vector<2x1xf32>,
    %c0_15 = arith.constant 0 : index
    %c0_16 = arith.constant 0 : index
    %26 = vector.load %arg9[%c0_15, %c0_16] : memref<2x1xi32, #tpu.memory_space<vmem>>, vector<2x1xi32>
    %27 = arith.select %22, %20, %26 : vector<2x1xi1>, vector<2x1xi32>
    %c0_17 = arith.constant 0 : index
    %c0_18 = arith.constant 0 : index
    %28 = vector.load %arg9[%c0_17, %c0_18] : memref<2x1xi32, #tpu.memory_space<vmem>>, vector<2x1xi32>
    tpu.vector_store %arg9[%c0_17, %c0_18], %27 {strides = array<i32>} : memref<2x1xi32, #tpu.memory_space<vmem>>, vector<2x1xi32>,
    %c0_i32_19 = arith.constant 0 : i32
    %29 = arith.cmpi eq, %arg0, %c0_i32_19 : i32
    %30 = arith.extui %29 : i1 to i32
    %c0_i32_20 = arith.constant 0 : i32
    %31 = arith.cmpi ne, %30, %c0_i32_20 : i32
    scf.if %31 {
      %c0_21 = arith.constant 0 : index
      %c0_22 = arith.constant 0 : index
      %32 = vector.load %arg9[%c0_21, %c0_22] : memref<2x1xi32, #tpu.memory_space<vmem>>, vector<2x1xi32>
      %c0_23 = arith.constant 0 : index
      %c0_24 = arith.constant 0 : index
      %33 = vector.load %arg6[%c0_23, %c0_24] : memref<2x1xi32, #tpu.memory_space<vmem>>, vector<2x1xi32>
      tpu.vector_store %arg6[%c0_23, %c0_24], %32 {strides = array<i32>} : memref<2x1xi32, #tpu.memory_space<vmem>>, vector<2x1xi32>,
    } else {
    }
    return
  }
  func.func @transform_0(%arg0: i32) -> (i32, i32) {
    %c0_i32 = arith.constant 0 : i32
    %c0_i32_0 = arith.constant 0 : i32
    %c0_i32_1 = arith.constant 0 : i32
    return %c0_i32, %c0_i32_0 : i32, i32
  }
  func.func @transform_1(%arg0: i32) -> (i32, i32) {
    %c0_i32 = arith.constant 0 : i32
    %c0_i32_0 = arith.constant 0 : i32
    %c0_i32_1 = arith.constant 0 : i32
    return %c0_i32, %c0_i32_0 : i32, i32
  }
  func.func @transform_2(%arg0: i32) -> (i32, i32) {
    %c0_i32 = arith.constant 0 : i32
    %c0_i32_0 = arith.constant 0 : i32
    %c0_i32_1 = arith.constant 0 : i32
    return %c0_i32, %c0_i32_0 : i32, i32
  }
  func.func @transform_3(%arg0: i32) -> (i32, i32) {
    %c0_i32 = arith.constant 0 : i32
    %c0_i32_0 = arith.constant 0 : i32
    return %c0_i32, %arg0 : i32, i32
  }
  func.func @transform_4(%arg0: i32) -> (i32, i32) {
    %c0_i32 = arith.constant 0 : i32
    %c0_i32_0 = arith.constant 0 : i32
    return %c0_i32, %arg0 : i32, i32
  }
  func.func @transform_5(%arg0: i32) -> (i32, i32) {
    %c0_i32 = arith.constant 0 : i32
    %c0_i32_0 = arith.constant 0 : i32
    %c0_i32_1 = arith.constant 0 : i32
    return %c0_i32, %c0_i32_0 : i32, i32
  }
}

</mosaic_0001>

<bundles_post_ra>
// kernel: tpu_custom_call.1
= control target key start
LH: loop header
LB: loop body
LE: loop exit
PB: predicated region body
PF: predicated region fallthrough
CT: control target
= control target key end

     0   :  { %10 = vsyncpa [#allocation6], 0  ;;  %s451_s0 = inlined_call_operand.hbm [shape: bf16[2,32], index: 0, kind: input, shape index: {}]   ;;  %s452_s1 = inlined_call_operand.hbm [shape: bf16[32,64], index: 1, kind: input, shape index: {}]   ;;  %s453_s2 = inlined_call_operand.vmem [shape: f32[1,64], index: 2, kind: input, shape index: {}]   ;;  %s454_s3 = inlined_call_operand.hbm [shape: bf16[64,128], index: 3, kind: input, shape index: {}]   ;;  %s455_s4 = inlined_call_operand.vmem [shape: f32[1,128], index: 4, kind: input, shape index: {}]   ;;  %s456_s5 = inlined_call_operand.vmem [shape: s32[2,1], index: 5, kind: output, shape index: {}]  }
   0x1   :  { %11 = vsyncpa [#allocation8], 0  ;;  %s385_s18 = smov [#allocation7]  }
   0x2   :  { %s27_s19 = sshll.u32 %s385_s18, 4  ;;  %s28_s19 = int_to_ptr.vmem [resolvable:$true] %s27_s19 }
   0x3   :  { %s329_s20 = scalar_lea.vmem %s28_s19, 256  ;;  %p334_p1 = scmp.lt.s32.totalorder %s28_s19, %s28_s19 }
   0x4   :  { %p330_p0 = scmp.ne.s32.totalorder %s28_s19, %s329_s20  ;;  %p335_p2 = scmp.lt.s32.totalorder %s329_s20, %s329_s20 }
   0x6   :  { %p336_p3 = por %p335_p2, %p334_p1 }
   0x8   :  { %p337_p4 = pnand %p336_p3, %p330_p0 }
   0xa   :  { %340 = shalt.err (!%p337_p4)
}
   0xb   :  { %s386_s21 = smov 64   ;;  %s387_s22 = smov 4  }
   0xc   :  { %33 = dma.hbm_to_vmem [thread:$0]  %s452_s1, 256, %s28_s19, [#allocation8], %s386_s21, %s386_s21, %s387_s22  }
   0xd   :  { %s388_s25 = smov [#allocation5]   ;;  %s389_s27 = smov [#allocation9]  }
   0xe   :  { %s18_s26 = sshll.u32 %s388_s25, 4  ;;  %s41_s28 = sshll.u32 %s389_s27, 4  ;;  %s19_s26 = int_to_ptr.vmem [resolvable:$true] %s18_s26  ;;  %s42_s28 = int_to_ptr.vmem [resolvable:$true] %s41_s28 }
   0xf   :  { %s349_s29 = scalar_lea.vmem %s19_s26, 16  ;;  %s353_s30 = scalar_lea.vmem %s19_s26, 32 }
  0x10   :  { %p350_p5 = scmp.ne.s32.totalorder %s19_s26, %s349_s29  ;;  %p354_p6 = scmp.lt.s32.totalorder %s19_s26, %s19_s26 }
  0x11   :  { %p355_p7 = scmp.lt.s32.totalorder %s353_s30, %s349_s29 }
  0x13   :  { %p356_p8 = por %p355_p7, %p354_p6 }
  0x15   :  { %p357_p9 = pnand %p356_p8, %p350_p5 }
  0x17   :  { %360 = shalt.err (!%p357_p9)
}
  0x18   :  { %21 = dma.hbm_to_vmem [thread:$0]  %s451_s0, 16, %s19_s26, [#allocation6]  }
  0x19   :  { %s369_s8 = scalar_lea.vmem %s42_s28, 512  ;;  %p374_p11 = scmp.lt.s32.totalorder %s42_s28, %s42_s28 }
  0x1a   :  { %p370_p10 = scmp.ne.s32.totalorder %s42_s28, %s369_s8  ;;  %p375_p12 = scmp.lt.s32.totalorder %s369_s8, %s369_s8 }
  0x1c   :  { %p376_p13 = por %p375_p12, %p374_p11 }
  0x1e   :  { %p377_p0 = pnand %p376_p13, %p370_p10 }
  0x20   :  { %380 = shalt.err (!%p377_p0)
}
  0x21   :  { %47 = dma.hbm_to_vmem [thread:$0]  %s454_s3, 512, %s42_s28, [#allocation8], %s386_s21, %s386_s21, %s387_s22  }
  0x22   :  { %381 = dma.done.wait [#allocation6], 16  }
  0x23   :  { %382 = vsyncadd [#allocation6], 4294967280 }
  0x24   :  { %383 = dma.done.wait [#allocation8], 768  }
  0x25   :  { %384 = vsyncadd [#allocation8], 4294966528  ;;  %v390_v0 = vmov 0.0   ;;  %vm391_vm0 = vmmov 0   ;;  %v315_v1 = vld [vmem:[#allocation7 + $0x8] sm:$0xff]   ;;  %v316_v2 = vld [vmem:[#allocation7] sm:$0xff]   ;;  %v227_v25 = vlaneseq }
  0x26   :  { %286 = vmatprep.subr.bf16.mxu0 %v390_v0  ;;  %290 = vmatprep.mubr.msk.bf16.mxu0 %vm391_vm0, %v390_v0  ;;  %v64_v3 = vld [vmem:[#allocation5] sm:$0x1]  ;;  %vm88_vm1 = vcmask 261120   ;;  %v317_v4 = vld [vmem:[#allocation9 + $0x18] sm:$0xff]   ;;  %v318_v5 = vld [vmem:[#allocation9 + $0x10] sm:$0xff]   ;;  %vm134_vm2 = vcmask 516096  }
  0x27   :  { %294 = vmatprep.subr.bf16.mxu1 %v390_v0  ;;  %302 = vmatprep.mubr.msk.bf16.mxu1 %vm391_vm0, %v390_v0  ;;  %v319_v6 = vld [vmem:[#allocation9 + $0x8] sm:$0xff]   ;;  %v320_v7 = vld [vmem:[#allocation9] sm:$0xff]   ;;  %vm179_vm3 = vcmask 523264   ;;  %vm136_vm4 = vcmask 1024   ;;  %v392_v17 = vmov -inf   ;;  %vm223_vm5 = vcmask 1041408  }
  0x28   :  { %287 = vmatpush3.bf16.msra.mxu0 %v315_v1  ;;  %295 = vmatpush3.bf16.msra.mxu1 %v317_v4  ;;  %v268_v8 = vld [vmem:[%s453_s2] ss:$0 sm:$0xff]  ;;  %137 = vst.msk [vmem:[#allocation3] sm:$0x3] %vm136_vm4, %v392_v17  ;;  %v228_v27 = vand.u32 127, %v227_v25  ;;  %v393_v34 = vmov 0  }
  0x29   :  { %288 = vmatprep.subr.bf16.mxu0 %v390_v0  ;;  %296 = vmatprep.subr.bf16.mxu1 %v390_v0  ;;  %v272_v18 = vld [vmem:[%s455_s4] ss:$0 sm:$0xff]  ;;  %138 = vst.msk [vmem:[#allocation4] sm:$0x3] %vm136_vm4, %v393_v34 }
  0x2c   :  { %289 = vmatpush3.bf16.msra.mxu0 %v316_v2  ;;  %297 = vmatpush3.bf16.msra.mxu1 %v318_v5 }
  0x2d   :  { %298 = vmatprep.subr.bf16.mxu1 %v390_v0 }
  0x2f   :  { %291 = vmatmul.mubr.msk.bf16.vlgmr.msra.gmra.mxu0 %vm88_vm1, %v64_v3  ;;  %v249_v26 = vld [vmem:[#allocation3] sm:$0x3] }
  0x30   :  { %299 = vmatpush3.bf16.msra.mxu1 %v319_v6  ;;  %v254_v43 = vld [vmem:[#allocation4] sm:$0x3] }
  0x31   :  { %300 = vmatprep.subr.bf16.mxu1 %v390_v0 }
  0x34   :  { %301 = vmatpush3.bf16.msra.mxu1 %v320_v7 }
  0xef   :  { %v126_v9 = vpop.f32.mrf.mxu0 }
  0xf0   :  { %v127_v10 = vadd.f32 %v268_v8, %v126_v9 }
  0xf1   :  { %v292_v11 = vpop.f32.mrf.mxu0 }
  0xf2   :  { %v132_v12 = vmax.f32 %v127_v10, 0.0 }
  0xf3   :  { %v129_v13 = vpop.f32.mrf.mxu0 }
  0xf4   :  { %v133_v14 = vpack.c.bf16 %v132_v12, %v132_v12 }
  0xf5   :  { %v293_v15 = vpop.f32.mrf.mxu0 }
  0xf6   :  { %135 = vst.msk [vmem:[#allocation2] sm:$0x1] %vm134_vm2, %v133_v14 }
  0xfd   :  { %v139_v16 = vld [vmem:[#allocation2] sm:$0x1] }
  0xfe   :  { %303 = vmatmul.mubr.msk.bf16.vlgmr.msra.gmra.mxu1 %vm179_vm3, %v139_v16 }
 0x1be   :  { %v217_v19 = vpop.f32.mrf.mxu1 }
 0x1bf   :  { %v218_v20 = vadd.f32 %v272_v18, %v217_v19 }
 0x1c0   :  { %v304_v21 = vpop.f32.mrf.mxu1 }
 0x1c1   :  { %v224_v22 = vsel %vm223_vm5, %v218_v20, -inf }
 0x1c2   :  { %225 = vmax.xlane.f32.xlu0 %v224_v22  ;;  %v220_v23 = vpop.f32.mrf.mxu1 }
 0x1c4   :  { %v305_v24 = vpop.f32.mrf.mxu1 }
 0x24b   :  { %v226_v28 = vpop.xlane.xlu0 %225 }
 0x24c   :  { %vm229_vm6 = vcmp.ge.f32.partialorder %v218_v20, %v226_v28  ;;  %vm250_vm7 = vcmp.gt.f32.partialorder %v226_v28, %v249_v26 }
 0x24d   :  { %v251_v29 = vsel %vm250_vm7, %v226_v28, %v249_v26  ;;  %v230_v30 = vsel %vm229_vm6, %v228_v27, 128 }
 0x24e   :  { %253 = vst.msk [vmem:[#allocation3] sm:$0x3] %vm136_vm4, %v251_v29  ;;  %v231_v31 = vsel %vm223_vm5, %v230_v30, 2147483647 }
 0x24f   :  { %v233_v32 = vshra.s32 %v231_v31, 16  ;;  %v232_v35 = vand.u32 65535, %v231_v31 }
 0x251   :  { %v235_v33 = vcvt.s32.f32 %v233_v32  ;;  %v234_v37 = vcvt.s32.f32 %v232_v35 }
 0x253   :  { %236 = vmin.xlane.f32.xlu0 %v235_v33 }
 0x2dc   :  { %v237_v36 = vpop.xlane.xlu0 %236 }
 0x2dd   :  { %vm238_vm8 = vcmp.eq.f32.partialorder %v235_v33, %v237_v36  ;;  %v243_v39 = vcvt.f32.s32 %v237_v36 }
 0x2de   :  { %v239_v38 = vsel %vm238_vm8, %v234_v37, inf }
 0x2df   :  { %240 = vmin.xlane.f32.xlu1 %v239_v38  ;;  %v244_v41 = vshll.u32 %v243_v39, 16 }
 0x368   :  { %v241_v40 = vpop.xlane.xlu1 %240 }
 0x369   :  { %v242_v42 = vcvt.f32.s32 %v241_v40 }
 0x36b   :  { %v245_v44 = vadd.s32 %v244_v41, %v242_v42 }
 0x36d   :  { %v255_v45 = vsel %vm250_vm7, %v245_v44, %v254_v43 }
 0x36e   :  { %256 = vst.msk [vmem:[#allocation4] sm:$0x3] %vm136_vm4, %v255_v45 }
 0x375   :  { %v260_v46 = vld [vmem:[#allocation4] sm:$0x3] }
 0x376   :  { %261 = vst.msk [vmem:[%s456_s5] sm:$0x3] %vm136_vm4, %v260_v46 }
 0x377   :  { %266 = vsyncpa [#allocation6], 1 }
 0x378   :  { %267 = vsyncpa [#allocation8], 1 }

</bundles_post_ra>
